<compile_context>
chip_gen: v7x
topology: tpu7x:2x2x1
jax: 0.10.0
libtpu: 0.0.40
codegen_flags: <defaults>
</compile_context>

<pallas_src>
import functools

import jax
import jax.numpy as jnp
from jax.experimental import pallas as pl
from jax.experimental.pallas import tpu as pltpu


def _senet_kernel(x_ref, w1_ref, w2_ref, o_ref, *, channels_last, hw, chunk):
    # channels_last=False: x_ref / o_ref are (Bb, C, HW)  (HW on the lane axis)
    # channels_last=True:  x_ref / o_ref are (Bb, HW, C)  (C  on the lane axis)
    n_chunks = hw // chunk
    bb = x_ref.shape[0]
    c = x_ref.shape[2] if channels_last else x_ref.shape[1]
    spatial_axis = 1 if channels_last else 2

    # ---- Squeeze: chunked global-average-pool over HW (f32 accumulation). ----
    acc = jnp.zeros((bb, c), jnp.float32)
    for i in range(n_chunks):                     # static slices, small live ranges
        lo = i * chunk
        if channels_last:
            xc = x_ref[:, lo:lo + chunk, :]
        else:
            xc = x_ref[:, :, lo:lo + chunk]
        acc = acc + jnp.sum(xc.astype(jnp.float32), axis=spatial_axis)
    avg = acc * (1.0 / hw)                        # (Bb, C)

    # ---- Excitation: Linear -> ReLU -> Linear -> Sigmoid (all f32). ----
    h = jnp.dot(avg, w1_ref[...].astype(jnp.float32),
                preferred_element_type=jnp.float32)       # (Bb, Cr)
    h = jnp.maximum(h, 0.0)
    s = jnp.dot(h, w2_ref[...].astype(jnp.float32),
                preferred_element_type=jnp.float32)       # (Bb, C)
    s = jax.nn.sigmoid(s)
    gate = s[:, None, :] if channels_last else s[:, :, None]

    # ---- Scale: chunked broadcast-multiply and store. ----
    for i in range(n_chunks):
        lo = i * chunk
        if channels_last:
            xc = x_ref[:, lo:lo + chunk, :]
            o_ref[:, lo:lo + chunk, :] = (
                xc.astype(jnp.float32) * gate).astype(o_ref.dtype)
        else:
            xc = x_ref[:, :, lo:lo + chunk]
            o_ref[:, :, lo:lo + chunk] = (
                xc.astype(jnp.float32) * gate).astype(o_ref.dtype)


def _choose_spatial_chunk(hw, cap=1024):
    """Largest divisor of hw that is <= cap, preferring multiples of 128."""
    if hw <= cap:
        return hw
    best, best_128 = 1, 0
    for d in range(1, cap + 1):
        if hw % d == 0:
            best = d
            if d % 128 == 0:
                best_128 = d
    return best_128 if best_128 else best


def _choose_batch_block(batch, bytes_per_batch, vmem_budget=8 * 1024 * 1024):
    """Largest divisor of `batch` whose (in+out, double-buffered) block fits the
    budget; prefer >= 2 grid steps so both v7x TensorCores get work."""
    max_bb = max(1, vmem_budget // (4 * bytes_per_batch))
    bb = 1
    for d in range(1, batch + 1):
        if batch % d == 0 and d <= max_bb:
            bb = d
    if batch // bb < 2 and batch >= 2:
        for d in range(batch // 2, 0, -1):
            if batch % d == 0 and d <= max_bb:
                bb = d
                break
    return bb


def senet_forward(x, w1_t, w2_t):
    """x: (B, C, H, W); w1_t: (C, C//16); w2_t: (C//16, C). Returns (B, C, H, W)."""
    B, C, H, W = x.shape
    HW = H * W
    Cr = w1_t.shape[1]

    # Lane-dense layout: put a multiple-of-128 axis last whenever possible.
    channels_last = (HW % 128 != 0) and (C % 128 == 0)
    if channels_last:
        x3 = jnp.transpose(x.reshape(B, C, HW), (0, 2, 1))   # (B, HW, C)
        d1, d2 = HW, C
    else:
        x3 = x.reshape(B, C, HW)                              # (B, C, HW)
        d1, d2 = C, HW

    chunk = _choose_spatial_chunk(HW)
    bb = _choose_batch_block(B, C * HW * x.dtype.itemsize)

    kernel = functools.partial(_senet_kernel, channels_last=channels_last,
                               hw=HW, chunk=chunk)

    out3 = pl.pallas_call(
        kernel,
        out_shape=jax.ShapeDtypeStruct((B, d1, d2), x.dtype),
        grid_spec=pltpu.PrefetchScalarGridSpec(
            num_scalar_prefetch=0,
            grid=(B // bb,),
            in_specs=[
                pl.BlockSpec((bb, d1, d2), lambda b: (b, 0, 0)),
                pl.BlockSpec((C, Cr), lambda b: (0, 0)),
                pl.BlockSpec((Cr, C), lambda b: (0, 0)),
            ],
            out_specs=pl.BlockSpec((bb, d1, d2), lambda b: (b, 0, 0)),
        ),
        compiler_params=pltpu.CompilerParams(
            dimension_semantics=("parallel",)),
    )(x3, w1_t, w2_t)

    if channels_last:
        return jnp.transpose(out3, (0, 2, 1)).reshape(B, C, H, W)
    return out3.reshape(B, C, H, W)


def senet_reference(x, w1_t, w2_t):
    """Pure-JAX reference mirroring the PyTorch forward."""
    avg = jnp.mean(x, axis=(2, 3))                       # (B, C)
    h = jnp.maximum(avg @ w1_t, 0.0)                     # (B, Cr)
    s = jax.nn.sigmoid(h @ w2_t)                         # (B, C)
    return x * s[:, :, None, None]


if __name__ == "__main__":
    key = jax.random.PRNGKey(0)

    def run_case(B, C, H, W):
        Cr = max(C // 16, 1)   # module hardcodes channel // 16
        kx, k1, k2 = jax.random.split(jax.random.fold_in(key, C * H + W), 3)
        x = jax.random.normal(kx, (B, C, H, W), dtype=jnp.float32)
        # PyTorch Linear(C, Cr) weight is (Cr, C); we store the transpose so the
        # kernel computes avg @ w1_t directly.
        w1_t = jax.random.normal(k1, (C, Cr), dtype=jnp.float32) * 0.1
        w2_t = jax.random.normal(k2, (Cr, C), dtype=jnp.float32) * 0.1

        out = jax.block_until_ready(senet_forward(x, w1_t, w2_t))
        ref = senet_reference(x, w1_t, w2_t)
        assert out.shape == (B, C, H, W)
        assert jnp.allclose(out, ref, atol=1e-5, rtol=1e-5), (
            f"mismatch vs reference for shape {(B, C, H, W)}")

    # Channels-first path (HW = 256, a multiple of 128).
    run_case(2, 32, 16, 16)
    # Channels-last path (HW = 49 not a multiple of 128; C = 128 lane-dense).
    run_case(2, 128, 7, 7)

    print("KERNEL_OK")
</pallas_src>

<mosaic_0001>
module attributes {stable_mosaic.version = 11 : i64} {
  func.func @_senet_kernel(%arg0: i32, %arg1: memref<1x32x256xf32, #tpu.memory_space<vmem>>, %arg2: memref<32x2xf32, #tpu.memory_space<vmem>>, %arg3: memref<2x32xf32, #tpu.memory_space<vmem>>, %arg4: memref<1x32x256xf32, #tpu.memory_space<vmem>>) attributes {dimension_semantics = [#tpu.dimension_semantics<parallel>], iteration_bounds = array<i64: 2>, scalar_prefetch = 0 : i64, scratch_operands = 0 : i64, tpu.core_type = #tpu.core_type<tc>, window_params = [{transform_indices = @transform_0, window_bounds = array<i64: 1, 32, 256>}, {pipeline_mode = #tpu.pipeline_mode<synchronous>, transform_indices = @transform_1, window_bounds = array<i64: 32, 2>}, {pipeline_mode = #tpu.pipeline_mode<synchronous>, transform_indices = @transform_2, window_bounds = array<i64: 2, 32>}, {transform_indices = @transform_3, window_bounds = array<i64: 1, 32, 256>}]} {
    %cst = arith.constant 0.000000e+00 : f32
    %0 = vector.broadcast %cst : f32 to vector<1x32xf32>
    %c0 = arith.constant 0 : index
    %c0_0 = arith.constant 0 : index
    %c0_1 = arith.constant 0 : index
    %1 = vector.load %arg1[%c0, %c0_0, %c0_1] : memref<1x32x256xf32, #tpu.memory_space<vmem>>, vector<1x32x256xf32>
    %cst_2 = arith.constant dense<0.000000e+00> : vector<1x32xf32>
    %2 = vector.multi_reduction <add>, %1, %cst_2 [2] : vector<1x32x256xf32> to vector<1x32xf32>
    %3 = arith.addf %0, %2 : vector<1x32xf32>
    %cst_3 = arith.constant 3.906250e-03 : f32
    %4 = vector.broadcast %cst_3 : f32 to vector<1x32xf32>
    %5 = arith.mulf %3, %4 : vector<1x32xf32>
    %c0_4 = arith.constant 0 : index
    %c0_5 = arith.constant 0 : index
    %6 = vector.load %arg2[%c0_4, %c0_5] : memref<32x2xf32, #tpu.memory_space<vmem>>, vector<32x2xf32>
    %cst_6 = arith.constant dense<0.000000e+00> : vector<1x2xf32>
    %7 = tpu.matmul %5, %6, %cst_6 {dimension_numbers = #tpu.dot_dimension_numbers<[1], [0], [0], [1], [0, 0, 1, 1], [], []>} : vector<1x32xf32>, vector<32x2xf32>, vector<1x2xf32> -> vector<1x2xf32>
    %cst_7 = arith.constant 0.000000e+00 : f32
    %8 = vector.broadcast %cst_7 : f32 to vector<1x2xf32>
    %9 = arith.maximumf %7, %8 : vector<1x2xf32>
    %c0_8 = arith.constant 0 : index
    %c0_9 = arith.constant 0 : index
    %10 = vector.load %arg3[%c0_8, %c0_9] : memref<2x32xf32, #tpu.memory_space<vmem>>, vector<2x32xf32>
    %cst_10 = arith.constant dense<0.000000e+00> : vector<1x32xf32>
    %11 = tpu.matmul %9, %10, %cst_10 {dimension_numbers = #tpu.dot_dimension_numbers<[1], [0], [0], [1], [0, 0, 1, 1], [], []>} : vector<1x2xf32>, vector<2x32xf32>, vector<1x32xf32> -> vector<1x32xf32>
    %12 = arith.negf %11 : vector<1x32xf32>
    %13 = math.exp %12 : vector<1x32xf32>
    %cst_11 = arith.constant 1.000000e+00 : f32
    %14 = vector.broadcast %cst_11 : f32 to vector<1x32xf32>
    %15 = arith.addf %14, %13 : vector<1x32xf32>
    %16 = arith.divf %14, %15 : vector<1x32xf32>
    %17 = vector.shape_cast %16 : vector<1x32xf32> to vector<1x32x1xf32>
    %c0_12 = arith.constant 0 : index
    %c0_13 = arith.constant 0 : index
    %c0_14 = arith.constant 0 : index
    %18 = vector.load %arg1[%c0_12, %c0_13, %c0_14] : memref<1x32x256xf32, #tpu.memory_space<vmem>>, vector<1x32x256xf32>
    %19 = vector.broadcast %17 : vector<1x32x1xf32> to vector<1x32x256xf32>
    %20 = arith.mulf %18, %19 : vector<1x32x256xf32>
    %c0_15 = arith.constant 0 : index
    %c0_16 = arith.constant 0 : index
    %c0_17 = arith.constant 0 : index
    %21 = vector.load %arg4[%c0_15, %c0_16, %c0_17] : memref<1x32x256xf32, #tpu.memory_space<vmem>>, vector<1x32x256xf32>
    tpu.vector_store %arg4[%c0_15, %c0_16, %c0_17], %20 {strides = array<i32>} : memref<1x32x256xf32, #tpu.memory_space<vmem>>, vector<1x32x256xf32>,
    return
  }
  func.func @transform_0(%arg0: i32) -> (i32, i32, i32) {
    %c0_i32 = arith.constant 0 : i32
    %c0_i32_0 = arith.constant 0 : i32
    %c0_i32_1 = arith.constant 0 : i32
    return %arg0, %c0_i32, %c0_i32_0 : i32, i32, i32
  }
  func.func @transform_1(%arg0: i32) -> (i32, i32) {
    %c0_i32 = arith.constant 0 : i32
    %c0_i32_0 = arith.constant 0 : i32
    %c0_i32_1 = arith.constant 0 : i32
    return %c0_i32, %c0_i32_0 : i32, i32
  }
  func.func @transform_2(%arg0: i32) -> (i32, i32) {
    %c0_i32 = arith.constant 0 : i32
    %c0_i32_0 = arith.constant 0 : i32
    %c0_i32_1 = arith.constant 0 : i32
    return %c0_i32, %c0_i32_0 : i32, i32
  }
  func.func @transform_3(%arg0: i32) -> (i32, i32, i32) {
    %c0_i32 = arith.constant 0 : i32
    %c0_i32_0 = arith.constant 0 : i32
    %c0_i32_1 = arith.constant 0 : i32
    return %arg0, %c0_i32, %c0_i32_0 : i32, i32, i32
  }
}

</mosaic_0001>

<bundles_post_ra>
// kernel: tpu_custom_call.1
= control target key start
LH: loop header
LB: loop body
LE: loop exit
PB: predicated region body
PF: predicated region fallthrough
CT: control target
= control target key end

     0   :  { %8 = vsyncpa [#allocation3], 0  ;;  %s979_s0 = inlined_call_operand.hbm [shape: f32[2,32,256], index: 0, kind: input, shape index: {}]   ;;  %s980_s1 = inlined_call_operand.vmem [shape: f32[32,2], index: 1, kind: input, shape index: {}]   ;;  %s981_s2 = inlined_call_operand.vmem [shape: f32[2,32], index: 2, kind: input, shape index: {}]   ;;  %s982_s3 = inlined_call_operand.hbm [shape: f32[2,32,256], index: 3, kind: output, shape index: {}]  }
   0x1   :  { %10 = vsyncpa [#allocation3 + $0x1], 0 }
   0x2   :  { %11 = vsyncpa [#allocation4], 0 }
   0x3   :  { %13 = vsyncpa [#allocation4 + $0x1], 0  ;;  %s766_s12 = smov 0   ;;  %s768_s13 = smov 0  }
   0x4   :  { %s770_s14 = smov 0   ;;  %s772_s15 = smov 0  }
   0x5 LB: > { %s787_s16 = sadd.s32 4294967295, %s735_s15   ;;  %s533_s17 = sadd.s32 4294967294, %s735_s15   ;;  %s735_s15 = sphi %s772_s15, %s995_s15   ;;  %s731_s14 = sphi %s770_s14, %s994_s14   ;;  %s727_s13 = sphi %s768_s13, %s993_s13   ;;  %s723_s12 = sphi %s766_s12, %s992_s12  }
   0x6   : > { %s791_s18 = sadd.s32 1, %s735_s15   ;;  %s26_s19 = sadd.s32 1, %s731_s14 }
   0x7   : > { %s23_s20 = ssub.s32 %s735_s15, %s791_s18  ;;  %p33_p0 = scmp.ne.s32.totalorder %s731_s14, %s727_s13 }
   0x8   : > { %p24_p1 = scmp.eq.s32.totalorder %s23_s20, 0  ;;  %p34_p2 = scmp.eq.s32.totalorder %s735_s15, 0 }
   0x9   : > { %p39_p3 = scmp.ne.s32.totalorder %s727_s13, %s723_s12  ;;  %p40_p4 = scmp.eq.s32.totalorder %s787_s16, 0 }
   0xa   : > { %s803_s21 = scalar_select %p24_p1, %s731_s14, %s26_s19  }
   0xb   : > { %p805_p5 = por %p34_p2, %p33_p0  ;;  %p809_p6 = por %p40_p4, %p39_p3 }
   0xc   : > { %p105_p7 = scmp.eq.s32.totalorder %s787_s16, 1  ;;  %p111_p8 = scmp.eq.s32.totalorder %s533_s17, 1 }
   0xd   : > { %p594_p10 = scmp.lt.s32.totalorder %s735_s15, 2  ;;  %s137_s26 = sand.u32 1, %s731_s14  }
   0xe   : > { %p816_p11 = por %p105_p7, %p33_p0  ;;  %p820_p12 = por %p111_p8, %p39_p3 }
   0xf   : > { %s551_s27 = sshll.u32 %s735_s15, 10  ;;  %s536_s28 = sshll.u32 %s137_s26, 6 }
  0x10   : > { %s986_s24 = scalar_select %p816_p11, 1, 0 }
  0x11   : > { %s987_s25 = scalar_select %p820_p12, 1, 0 }
  0x12   : > { %s829_s4 = scalar_lea.hbm %s979_s0, %s551_s27  ;;  %s141_s5 = scalar_lea.vmem [#allocation2], %s536_s28 }
  0x13   : > { %s148_s6 = sshll.u32 %s141_s5, 4  ;;  %p833_p13 = pnand %p594_p10, %p805_p5  ;;  %s837_s6 = int_to_ptr.vmem [resolvable:$true] %s148_s6 }
  0x14   : > { %s839_s8 = scalar_lea.sflag [#allocation3], %s137_s26  ;;  %s639_s9 = scalar_lea.hbm %s829_s4, 1024 }
  0x15   : > { %p640_p0 = scmp.ne.s32.totalorder %s829_s4, %s639_s9  ;;  %p641_p1 = pneg %p833_p13 }
  0x16   : > { %s644_s17 = scalar_lea.hbm %s979_s0, 2048  ;;  %p645_p4 = scmp.lt.u32.totalorder %s829_s4, %s979_s0 }
  0x17   : > { %p642_p2 = pnand %p641_p1, %p640_p0  ;;  %p646_p5 = scmp.lt.u32.totalorder %s644_s17, %s639_s9 }
  0x18   : > { %p648_p8 = scmp.lt.u32.totalorder %s639_s9, %s829_s4 }
  0x19   : > { %p643_p3 = pneg %p642_p2  ;;  %p647_p7 = por %p646_p5, %p645_p4 }
  0x1b   : > { %p649_p10 = por %p648_p8, %p647_p7 }
  0x1d   : > { %p650_p9 = pnand %p649_p10, %p643_p3 }
  0x1f   : > { %653 = shalt.err (!%p650_p9)
}
  0x20   : > { %s654_s22 = scalar_lea.vmem %s837_s6, 1024  ;;  %s737_s26 = smov [#allocation2]  }
  0x21   : > { %p655_p0 = scmp.ne.s32.totalorder %s837_s6, %s654_s22  ;;  %s659_s27 = sshll.u32 %s737_s26, 4  ;;  %s660_s27 = int_to_ptr.vmem [resolvable:$false] %s659_s27 }
  0x22   : > { %s661_s28 = scalar_lea.vmem %s660_s27, 2048  ;;  %p662_p11 = scmp.lt.s32.totalorder %s837_s6, %s660_s27 }
  0x23   : > { %p657_p2 = pnand %p655_p0, %p641_p1  ;;  %p663_p4 = scmp.lt.s32.totalorder %s661_s28, %s654_s22 }
  0x25   : > { %p658_p12 = pneg %p657_p2  ;;  %p664_p5 = por %p663_p4, %p662_p11 }
  0x27   : > { %p665_p7 = pnand %p664_p5, %p658_p12 }
  0x29   : > { %668 = shalt.err (!%p665_p7)
}
  0x2a   : > { %s738_s29 = smov 256   ;;  %s739_s30 = smov 16  }
  0x2b   : > { %589 = dma.hbm_to_vmem [thread:$0]  (!%p833_p13), %s829_s4, 1024, %s837_s6, %s839_s8, %s738_s29, %s738_s29, %s739_s30  }
  0x2c   : > { %p539_p9 = scmp.ge.s32.totalorder %s735_s15, 1  ;;  %p156_p1 = scmp.lt.s32.totalorder %s735_s15, 3 }
  0x2e   : > { %p157_p3 = pnand %p539_p9, %p156_p1 }
  0x2f   : > { %s870_s5 = sand.u32 (!%p157_p3), 1, %s727_s13  }
  0x30   : > { %160 = sbr.rel (%p157_p3) target bundleno = 806 (0x326), region = 32  ;;  %s540_s9 = sshll.u32 (!%p157_p3), %s870_s5, 6 }
  0x31   : > { %s163_s10 = scalar_lea.sflag (!%p157_p3), [#allocation3], %s870_s5  ;;  %s166_s11 = scalar_lea.vmem (!%p157_p3), [#allocation2], %s540_s9 }
  0x37   : > { %714 = dma.done.wait (%p809_p6), %s163_s10, 1024  }
  0x38   : > { %716 = vsyncadd (%p809_p6), %s163_s10, 4294966272  ;;  %v880_v0 = vld [vmem:[%s166_s11] sm:$0xff]  ;;  %v882_v1 = vld [vmem:[%s166_s11 + $0x8] sm:$0xff]  ;;  %v740_v15 = vmov 0.0|0.0   ;;  %vm741_vm0 = vmmov 0   ;;  %v742_v19 = vmov 0.0   ;;  %v225_v20 = vlaneseq }
  0x39   : > { %v884_v2 = vld [vmem:[%s166_s11 + $0x20] sm:$0xff]  ;;  %v197_v3 = vadd.f32 %v882_v1, %v880_v0  ;;  %v888_v4 = vld [vmem:[%s166_s11 + $0x28] sm:$0xff]  ;;  %v890_v5 = vld [vmem:[%s166_s11 + $0x10] sm:$0xff]  ;;  %576 = vmatprep.subr.bf16.mxu0 %v740_v15  ;;  %568 = vmatprep.mubr.msk.f32.mxu0 %vm741_vm0, %v742_v19  ;;  %vm236_vm1 = vcmask 130112   ;;  %vm243_vm2 = vcmask 195712   ;;  %vm250_vm3 = vcmask 261312  }
  0x3a   : > { %v892_v6 = vld [vmem:[%s166_s11 + $0x18] sm:$0xff]  ;;  %v203_v7 = vadd.f32 %v888_v4, %v884_v2  ;;  %v896_v8 = vld [vmem:[%s166_s11 + $0x30] sm:$0xff]  ;;  %v217_v12 = vld [vmem:[%s980_s1] sm:$0xff]  ;;  %571 = vmatprep.subr.mxu1 %v742_v19  ;;  %573 = vmatprep.mubr.msk.f32.mxu1 %vm741_vm0, %v742_v19  ;;  %v226_v21 = vand.u32 127, %v225_v20  ;;  %v228_v22 = vshrl.u32 %v225_v20, 7  ;;  %vm252_vm4 = vcmask 261120  }
  0x3b   : > { %v898_v9 = vld [vmem:[%s166_s11 + $0x38] sm:$0xff]  ;;  %198 = vadd.xlane.f32.xlu0 %v197_v3  ;;  %v200_v10 = vadd.f32 %v892_v6, %v890_v5  ;;  %v218_v13 = vld [vmem:[%s980_s1 + $0x8] sm:$0xff]  ;;  %v219_v16 = vld [vmem:[%s980_s1 + $0x10] sm:$0xff]  ;;  %vm331_vm5 = vcmask 1041408   ;;  %vm327_vm6 = vcmask 15360   ;;  %s188_s27 = scalar_lea.vmem [#allocation5], %s540_s9 }
  0x3c   : > { %204 = vadd.xlane.f32.xlu1 %v203_v7  ;;  %v206_v11 = vadd.f32 %v898_v9, %v896_v8  ;;  %v577_v14 = vpack.c.bf16 %v218_v13, %v217_v12  ;;  %v220_v17 = vld [vmem:[%s980_s1 + $0x18] sm:$0xff]  ;;  %v231_v23 = vadd.s32 4294967288, %v226_v21  ;;  %v238_v25 = vadd.s32 4294967280, %v226_v21  ;;  %v326_v45 = vld [vmem:[%s981_s2] sm:$0x3]  ;;  %s460_s28 = sshll.u32 %s188_s27, 4  ;;  %s928_s28 = int_to_ptr.vmem [resolvable:$true] %s460_s28 }
  0x3d   : > { %v580_v18 = vpack.c.bf16 %v220_v17, %v219_v16  ;;  %v245_v26 = vadd.s32 4294967272, %v226_v21  ;;  %v229_v28 = vsub.s32 %v226_v21, %v228_v22  ;;  %572 = vmatpush3.msk.msra.mxu1 %vm331_vm5, %v326_v45  ;;  %v413_v54 = vsub.s32 0, %v228_v22  ;;  %s552_s29 = sshll.u32 %s787_s16, 10  ;;  %s447_s16 = scalar_lea.sflag [#allocation4], %s870_s5 }
  0x3e   : > { %578 = vmatpush3.bf16.msra.mxu0 %v577_v14  ;;  %v234_v30 = vsub.s32 %v231_v23, %v228_v22  ;;  %v241_v31 = vsub.s32 %v238_v25, %v228_v22  ;;  %s933_s10 = scalar_lea.hbm %s982_s3, %s552_s29  ;;  %s669_s11 = scalar_lea.vmem %s928_s28, 1024 }
  0x3f   : > { %201 = vadd.xlane.f32.xlu0 %v200_v10  ;;  %579 = vmatprep.subr.bf16.mxu0 %v740_v15  ;;  %v248_v34 = vsub.s32 %v245_v26, %v228_v22  ;;  %p670_p6 = scmp.ne.s32.totalorder %s928_s28, %s669_s11  ;;  %p989_p11 = scmp.ne.s32.totalorder %s986_s24, 0 }
  0x40   : > { %207 = vadd.xlane.f32.xlu1 %v206_v11  ;;  %s743_s23 = smov [#allocation5]  }
  0x41   : > { %p671_p12 = pnand %p670_p6, %p989_p11  ;;  %s673_s4 = sshll.u32 %s743_s23, 4  ;;  %s674_s4 = int_to_ptr.vmem [resolvable:$false] %s673_s4 }
  0x42   : > { %581 = vmatpush3.bf16.msra.mxu0 %v580_v18  ;;  %s675_s6 = scalar_lea.vmem %s674_s4, 2048  ;;  %p676_p8 = scmp.lt.s32.totalorder %s928_s28, %s674_s4 }
  0x43   : > { %p672_p13 = pneg %p671_p12  ;;  %p677_p10 = scmp.lt.s32.totalorder %s675_s6, %s669_s11 }
  0x45   : > { %p678_p0 = por %p677_p10, %p676_p8 }
  0x47   : > { %p679_p2 = pnand %p678_p0, %p672_p13 }
  0xc8   : > { %v199_v24 = vpop.xlane.xlu0 %198 }
  0xc9   : > { %v205_v27 = vpop.xlane.xlu1 %204  ;;  %v213_v29 = vmul.f32 0.00390625, %v199_v24 }
  0xca   : > { %v215_v32 = vmul.f32 0.00390625, %v205_v27 }
  0xcb   : > { %v230_v38 = vrot.slane %v213_v29, %v229_v28 }
  0xcc   : > { %v202_v33 = vpop.xlane.xlu0 %201  ;;  %v242_v40 = vrot.slane %v215_v32, %v241_v31 }
  0xcd   : > { %v214_v35 = vmul.f32 0.00390625, %v202_v33  ;;  %v208_v36 = vpop.xlane.xlu1 %207 }
  0xce   : > { %v216_v37 = vmul.f32 0.00390625, %v208_v36 }
  0xcf   : > { %v235_v39 = vrot.slane %v214_v35, %v234_v30 }
  0xd0   : > { %v249_v41 = vrot.slane %v216_v37, %v248_v34 }
  0xd1   : > { %v237_v42 = vsel %vm236_vm1, %v235_v39, %v230_v38 }
  0xd2   : > { %v244_v43 = vsel %vm243_vm2, %v242_v40, %v237_v42 }
  0xd3   : > { %v251_v44 = vsel %vm250_vm3, %v249_v41, %v244_v43 }
  0xd4   : > { %569 = vmatmul.mubr.msk.f32.vlgmr.msra.gmra.mrb[0].mxu0 %vm252_vm4, %v251_v44 }
 0x1a7   : > { %v321_v46 = vpop.f32.mrb[0].mxu0 }
 0x1a8   : > { %v325_v47 = vmax.f32 %v321_v46, 0.0  ;;  %v570_v48 = vpop.f32.mrb[1].mxu0 }
 0x1aa   : > { %574 = vmatmul.mubr.msk.f32.vlgmr.msra.gmra.mrb[0].mxu1 %vm327_vm6, %v325_v47 }
 0x27d   : > { %v401_v49 = vpop.f32.mrb[0].mxu1 }
 0x27e   : > { %v545_v50 = vmul.f32 -1.442695, %v401_v49  ;;  %v575_v51 = vpop.f32.mrb[1].mxu1 }
 0x280   : > { %635 = vpow2.f32 %v545_v50 }
 0x28a   : > { %v636_v52 = vpop.eup %635 }
 0x28b   : > { %v408_v53 = vadd.f32 1.0, %v636_v52 }
 0x28d   : > { %637 = vrcp.f32 %v408_v53 }
 0x297   : > { %v638_v55 = vpop.eup %637 }
 0x298   : > { %v414_v56 = vrot.slane %v638_v55, %v413_v54 }
 0x29a   : > { %420 = vbcast.lane.b32.xlu1 %v414_v56, 264  ;;  %416 = vbcast.lane.b32.xlu0 %v414_v56, 256 }
 0x29e   : > { %424 = vbcast.lane.b32.xlu1 %v414_v56, 272 }
 0x2a2   : > { %428 = vbcast.lane.b32.xlu1 %v414_v56, 280 }
 0x30c   : > { %v421_v57 = vpop.permute.xlu1 %420  ;;  %v417_v58 = vpop.permute.xlu0 %416 }
 0x30d   : > { %v432_v59 = vmul.f32 %v421_v57, %v890_v5  ;;  %v433_v60 = vmul.f32 %v421_v57, %v892_v6  ;;  %v430_v61 = vmul.f32 %v417_v58, %v880_v0  ;;  %v431_v62 = vmul.f32 %v417_v58, %v882_v1 }
 0x30f   : > { %440 = vst [vmem:[%s188_s27 + $0x10] sm:$0xff] %v432_v59  ;;  %441 = vst [vmem:[%s188_s27 + $0x18] sm:$0xff] %v433_v60 }
 0x310   : > { %438 = vst [vmem:[%s188_s27] sm:$0xff] %v430_v61  ;;  %439 = vst [vmem:[%s188_s27 + $0x8] sm:$0xff] %v431_v62  ;;  %v425_v63 = vpop.permute.xlu1 %424 }
 0x311   : > { %v434_v3 = vmul.f32 %v425_v63, %v884_v2  ;;  %v435_v5 = vmul.f32 %v425_v63, %v888_v4 }
 0x313   : > { %442 = vst [vmem:[%s188_s27 + $0x20] sm:$0xff] %v434_v3  ;;  %443 = vst [vmem:[%s188_s27 + $0x28] sm:$0xff] %v435_v5 }
 0x314   : > { %v429_v0 = vpop.permute.xlu1 %428 }
 0x315   : > { %v436_v1 = vmul.f32 %v429_v0, %v896_v8  ;;  %v437_v2 = vmul.f32 %v429_v0, %v898_v9 }
 0x317   : > { %444 = vst [vmem:[%s188_s27 + $0x30] sm:$0xff] %v436_v1  ;;  %445 = vst [vmem:[%s188_s27 + $0x38] sm:$0xff] %v437_v2 }
 0x318   : > { %682 = shalt.err (!%p679_p2)
}
 0x319   : > { %s683_s7 = scalar_lea.hbm %s933_s10, 1024  ;;  %s687_s19 = scalar_lea.hbm %s982_s3, 2048 }
 0x31a   : > { %p684_p4 = scmp.ne.s32.totalorder %s933_s10, %s683_s7  ;;  %p688_p9 = scmp.lt.u32.totalorder %s933_s10, %s982_s3 }
 0x31b   : > { %p689_p1 = scmp.lt.u32.totalorder %s687_s19, %s683_s7  ;;  %p691_p6 = scmp.lt.u32.totalorder %s683_s7, %s933_s10 }
 0x31c   : > { %p685_p5 = pnand %p684_p4, %p989_p11 }
 0x31d   : > { %p690_p3 = por %p689_p1, %p688_p9 }
 0x31e   : > { %p686_p7 = pneg %p685_p5 }
 0x31f   : > { %p692_p12 = por %p691_p6, %p690_p3 }
 0x321   : > { %p693_p13 = pnand %p692_p12, %p686_p7 }
 0x323   : > { %696 = shalt.err (!%p693_p13)
}
 0x324   : > { %s744_s26 = smov 256   ;;  %s745_s27 = smov 16  }
 0x325   : > { %584 = dma.vmem_to_hbm [thread:$0]  (%p989_p11), %s928_s28, 1024, %s933_s10, %s447_s16, %s744_s26, %s744_s26, %s745_s27  }
 0x326 PF: > { %s475_s29 = sand.u32 1, %s723_s12   ;;  %p990_p8 = scmp.ne.s32.totalorder %s987_s25, 0 }
 0x327   : > { %p991_p10 = scmp.ge.s32.totalorder %s735_s15, 2  ;;  %s476_s30 = scalar_lea.sflag [#allocation4], %s475_s29 }
 0x329   : > { %p591_p0 = pnand %p991_p10, %p990_p8 }
 0x32b   : > { %718 = dma.done.wait (!%p591_p0), %s476_s30, 1024  }
 0x32c   : > { %720 = vsyncadd (!%p591_p0), %s476_s30, 4294966272  ;;  %p16_p2 = scmp.ge.s32.totalorder %s791_s18, 4   ;;  %s992_s12 = smov %s727_s13 }
 0x32d   : > { %s993_s13 = smov %s731_s14  ;;  %s994_s14 = smov %s803_s21 }
 0x32e   : > { %s995_s15 = smov %s791_s18  ;;  %18 = sbr.rel (!%p16_p2) target bundleno = 5 (0x5), region = 77 }
 0x335   :  { %481 = vsyncpa [#allocation3], 1 }
 0x336   :  { %483 = vsyncpa [#allocation3 + $0x1], 1 }
 0x337   :  { %484 = vsyncpa [#allocation4], 1 }
 0x338   :  { %486 = vsyncpa [#allocation4 + $0x1], 1 }

</bundles_post_ra>
